<compile_context>
chip_gen: v5e
topology: v5e:2x2
jax: 0.10.0
libtpu: 0.0.40
codegen_flags: <defaults>
</compile_context>

<pallas_src>
import functools

import jax
import jax.numpy as jnp
import numpy as np
from jax.experimental import pallas as pl
from jax.experimental.pallas import tpu as pltpu

HIDDEN = 128   # hidden width of the DQN MLP
K_PAD = 128    # input features zero-padded to full lane width
N_PAD = 128    # action logits zero-padded to full lane width (lane-dense store)
TB_MAX = 1024  # max batch-tile rows (per-tile VMEM: ~256KiB in + ~512KiB out)


def _round_up(n, m):
    return ((n + m - 1) // m) * m


def dqn_kernel(x_ref, w1_ref, w2_ref, w3_ref, b_ref, o_ref):
    # Layer 1: relu(x @ w1 + b1)  -- bf16 operands on the MXU, f32 accumulation.
    h1 = jnp.dot(x_ref[...], w1_ref[...], preferred_element_type=jnp.float32)
    h1 = jnp.maximum(h1 + b_ref[0:1, :], 0.0)
    # Layer 2: relu(h1 @ w2 + b2)
    h2 = jnp.dot(h1.astype(jnp.bfloat16), w2_ref[...],
                 preferred_element_type=jnp.float32)
    h2 = jnp.maximum(h2 + b_ref[1:2, :], 0.0)
    # Layer 3: h2 @ w3 + b3 (no activation); full-lane (128-wide) unmasked store.
    out = jnp.dot(h2.astype(jnp.bfloat16), w3_ref[...],
                  preferred_element_type=jnp.float32)
    o_ref[...] = (out + b_ref[2:3, :]).astype(o_ref.dtype)


@functools.partial(jax.jit, static_argnames=("num_inputs", "num_actions"))
def _dqn_forward_impl(x, w1, w2, w3, b, *, num_inputs, num_actions):
    B = x.shape[0]

    # Batch tile: cap at TB_MAX rows; small batches run as a single tile.
    TB = min(TB_MAX, _round_up(max(B, 1), 8))
    n_tiles = pl.cdiv(B, TB)
    B_pad = n_tiles * TB

    # Zero-pad batch rows and input features; feed the MXU bf16.
    xp = jnp.pad(x.astype(jnp.bfloat16),
                 ((0, B_pad - B), (0, K_PAD - num_inputs)))

    flops = 2 * B_pad * (K_PAD * HIDDEN + HIDDEN * HIDDEN + HIDDEN * N_PAD)
    bytes_accessed = (xp.size * 2 + (w1.size + w2.size + w3.size) * 2
                      + b.size * 4 + B_pad * N_PAD * 4)

    out = pl.pallas_call(
        dqn_kernel,
        out_shape=jax.ShapeDtypeStruct((B_pad, N_PAD), jnp.float32),
        grid=(n_tiles,),
        in_specs=[
            pl.BlockSpec((TB, K_PAD), lambda i: (i, 0)),        # batch tile
            pl.BlockSpec((K_PAD, HIDDEN), lambda i: (0, 0)),    # w1, resident
            pl.BlockSpec((HIDDEN, HIDDEN), lambda i: (0, 0)),   # w2, resident
            pl.BlockSpec((HIDDEN, N_PAD), lambda i: (0, 0)),    # w3, resident
            pl.BlockSpec((3, N_PAD), lambda i: (0, 0)),         # packed biases
        ],
        out_specs=pl.BlockSpec((TB, N_PAD), lambda i: (i, 0)),
        compiler_params=pltpu.CompilerParams(
            dimension_semantics=("parallel",)),
        cost_estimate=pl.CostEstimate(
            flops=flops, transcendentals=0, bytes_accessed=bytes_accessed),
    )(xp, w1, w2, w3, b)

    return out[:B, :num_actions]


def dqn_forward(x, kparams):
    """x: [B, num_inputs] float32. kparams: output of pack_dqn_params."""
    return _dqn_forward_impl(
        x, kparams["w1"], kparams["w2"], kparams["w3"], kparams["b"],
        num_inputs=kparams["num_inputs"], num_actions=kparams["num_actions"])


def init_dqn_params(key, num_inputs, num_actions, hidden=HIDDEN):
    """PyTorch nn.Linear default init (U(-1/sqrt(fan_in), +)), torch layout [out, in]."""
    ks = jax.random.split(key, 6)

    def linear(kw, kb, fan_in, fan_out):
        bound = 1.0 / np.sqrt(fan_in)
        w = jax.random.uniform(kw, (fan_out, fan_in), jnp.float32, -bound, bound)
        b = jax.random.uniform(kb, (fan_out,), jnp.float32, -bound, bound)
        return w, b

    w1, b1 = linear(ks[0], ks[1], num_inputs, hidden)
    w2, b2 = linear(ks[2], ks[3], hidden, hidden)
    w3, b3 = linear(ks[4], ks[5], hidden, num_actions)
    return {"w1": w1, "b1": b1, "w2": w2, "b2": b2, "w3": w3, "b3": b3}


def pack_dqn_params(params, num_inputs, num_actions, hidden=HIDDEN):
    """Kernel-ready params: transpose to [in, out], zero-pad to MXU-friendly
    shapes, cast weights to bf16, pack the three biases into one [3, 128] f32."""
    w1 = jnp.zeros((K_PAD, hidden), jnp.float32)
    w1 = w1.at[:num_inputs, :].set(params["w1"].T)
    w2 = params["w2"].T
    w3 = jnp.zeros((hidden, N_PAD), jnp.float32)
    w3 = w3.at[:, :num_actions].set(params["w3"].T)
    b = jnp.zeros((3, N_PAD), jnp.float32)
    b = b.at[0, :hidden].set(params["b1"])
    b = b.at[1, :hidden].set(params["b2"])
    b = b.at[2, :num_actions].set(params["b3"])
    return {"w1": w1.astype(jnp.bfloat16), "w2": w2.astype(jnp.bfloat16),
            "w3": w3.astype(jnp.bfloat16), "b": b,
            "num_inputs": num_inputs, "num_actions": num_actions}


def dqn_reference_bf16(x, kparams):
    """Pure-JAX reference with the kernel's exact numerics (bf16 ops, f32 acc)."""
    B = x.shape[0]
    xp = jnp.zeros((B, K_PAD), jnp.bfloat16)
    xp = xp.at[:, :kparams["num_inputs"]].set(x.astype(jnp.bfloat16))
    b = kparams["b"]
    h1 = jnp.dot(xp, kparams["w1"], preferred_element_type=jnp.float32) + b[0:1]
    h1 = jnp.maximum(h1, 0.0)
    h2 = jnp.dot(h1.astype(jnp.bfloat16), kparams["w2"],
                 preferred_element_type=jnp.float32) + b[1:2]
    h2 = jnp.maximum(h2, 0.0)
    out = jnp.dot(h2.astype(jnp.bfloat16), kparams["w3"],
                  preferred_element_type=jnp.float32) + b[2:3]
    return out[:, :kparams["num_actions"]]


def dqn_reference_f32(x, params):
    """Original PyTorch-semantics f32 forward (looser sanity check)."""
    h1 = jnp.maximum(x @ params["w1"].T + params["b1"], 0.0)
    h2 = jnp.maximum(h1 @ params["w2"].T + params["b2"], 0.0)
    return h2 @ params["w3"].T + params["b3"]


if __name__ == "__main__":
    key = jax.random.PRNGKey(0)
    k_params, k_x = jax.random.split(key)

    B = 256          # batch of states
    num_inputs = 16  # state dimension
    num_actions = 4  # action space size

    params = init_dqn_params(k_params, num_inputs, num_actions)
    kparams = pack_dqn_params(params, num_inputs, num_actions)
    x = jax.random.normal(k_x, (B, num_inputs), jnp.float32)

    out = dqn_forward(x, kparams)
    out = jax.block_until_ready(out)
    assert out.shape == (B, num_actions)

    # Tight check vs. a reference with identical (bf16-weight) numerics.
    ref = dqn_reference_bf16(x, kparams)
    np.testing.assert_allclose(np.asarray(out), np.asarray(ref),
                               rtol=1e-3, atol=1e-3)

    # Loose sanity check vs. original f32 semantics (bf16 weight quantization).
    ref_f32 = dqn_reference_f32(x, params)
    np.testing.assert_allclose(np.asarray(out), np.asarray(ref_f32),
                               rtol=5e-2, atol=5e-2)

    # Single-state path (what DQN.act uses): B=1.
    q1 = jax.block_until_ready(dqn_forward(x[:1], kparams))
    np.testing.assert_allclose(np.asarray(q1), np.asarray(ref[:1]),
                               rtol=1e-3, atol=1e-3)

    print("KERNEL_OK")
</pallas_src>

<mosaic_0001>
module attributes {stable_mosaic.version = 11 : i64} {
  func.func @dqn_kernel(%arg0: i32, %arg1: memref<256x128xbf16, #tpu.memory_space<vmem>>, %arg2: memref<128x128xbf16, #tpu.memory_space<vmem>>, %arg3: memref<128x128xbf16, #tpu.memory_space<vmem>>, %arg4: memref<128x128xbf16, #tpu.memory_space<vmem>>, %arg5: memref<3x128xf32, #tpu.memory_space<vmem>>, %arg6: memref<256x128xf32, #tpu.memory_space<vmem>>) attributes {dimension_semantics = [#tpu.dimension_semantics<parallel>], iteration_bounds = array<i64: 1>, scalar_prefetch = 0 : i64, scratch_operands = 0 : i64, tpu.core_type = #tpu.core_type<tc>, window_params = [{transform_indices = @transform_0, window_bounds = array<i64: 256, 128>}, {pipeline_mode = #tpu.pipeline_mode<synchronous>, transform_indices = @transform_1, window_bounds = array<i64: 128, 128>}, {pipeline_mode = #tpu.pipeline_mode<synchronous>, transform_indices = @transform_2, window_bounds = array<i64: 128, 128>}, {pipeline_mode = #tpu.pipeline_mode<synchronous>, transform_indices = @transform_3, window_bounds = array<i64: 128, 128>}, {pipeline_mode = #tpu.pipeline_mode<synchronous>, transform_indices = @transform_4, window_bounds = array<i64: 3, 128>}, {transform_indices = @transform_5, window_bounds = array<i64: 256, 128>}]} {
    %c0 = arith.constant 0 : index
    %c0_0 = arith.constant 0 : index
    %0 = vector.load %arg1[%c0, %c0_0] : memref<256x128xbf16, #tpu.memory_space<vmem>>, vector<256x128xbf16>
    %c0_1 = arith.constant 0 : index
    %c0_2 = arith.constant 0 : index
    %1 = vector.load %arg2[%c0_1, %c0_2] : memref<128x128xbf16, #tpu.memory_space<vmem>>, vector<128x128xbf16>
    %cst = arith.constant dense<0.000000e+00> : vector<256x128xf32>
    %2 = tpu.matmul %0, %1, %cst {dimension_numbers = #tpu.dot_dimension_numbers<[1], [0], [0], [1], [0, 0, 1, 1], [], []>} : vector<256x128xbf16>, vector<128x128xbf16>, vector<256x128xf32> -> vector<256x128xf32>
    %c0_3 = arith.constant 0 : index
    %c0_4 = arith.constant 0 : index
    %3 = vector.load %arg5[%c0_3, %c0_4] : memref<3x128xf32, #tpu.memory_space<vmem>>, vector<1x128xf32>
    %4 = vector.broadcast %3 : vector<1x128xf32> to vector<256x128xf32>
    %5 = arith.addf %2, %4 : vector<256x128xf32>
    %cst_5 = arith.constant 0.000000e+00 : f32
    %6 = vector.broadcast %cst_5 : f32 to vector<256x128xf32>
    %7 = arith.maximumf %5, %6 : vector<256x128xf32>
    %8 = arith.truncf %7 : vector<256x128xf32> to vector<256x128xbf16>
    %c0_6 = arith.constant 0 : index
    %c0_7 = arith.constant 0 : index
    %9 = vector.load %arg3[%c0_6, %c0_7] : memref<128x128xbf16, #tpu.memory_space<vmem>>, vector<128x128xbf16>
    %cst_8 = arith.constant dense<0.000000e+00> : vector<256x128xf32>
    %10 = tpu.matmul %8, %9, %cst_8 {dimension_numbers = #tpu.dot_dimension_numbers<[1], [0], [0], [1], [0, 0, 1, 1], [], []>} : vector<256x128xbf16>, vector<128x128xbf16>, vector<256x128xf32> -> vector<256x128xf32>
    %c1 = arith.constant 1 : index
    %c0_9 = arith.constant 0 : index
    %11 = vector.load %arg5[%c1, %c0_9] : memref<3x128xf32, #tpu.memory_space<vmem>>, vector<1x128xf32>
    %12 = vector.broadcast %11 : vector<1x128xf32> to vector<256x128xf32>
    %13 = arith.addf %10, %12 : vector<256x128xf32>
    %cst_10 = arith.constant 0.000000e+00 : f32
    %14 = vector.broadcast %cst_10 : f32 to vector<256x128xf32>
    %15 = arith.maximumf %13, %14 : vector<256x128xf32>
    %16 = arith.truncf %15 : vector<256x128xf32> to vector<256x128xbf16>
    %c0_11 = arith.constant 0 : index
    %c0_12 = arith.constant 0 : index
    %17 = vector.load %arg4[%c0_11, %c0_12] : memref<128x128xbf16, #tpu.memory_space<vmem>>, vector<128x128xbf16>
    %cst_13 = arith.constant dense<0.000000e+00> : vector<256x128xf32>
    %18 = tpu.matmul %16, %17, %cst_13 {dimension_numbers = #tpu.dot_dimension_numbers<[1], [0], [0], [1], [0, 0, 1, 1], [], []>} : vector<256x128xbf16>, vector<128x128xbf16>, vector<256x128xf32> -> vector<256x128xf32>
    %c2 = arith.constant 2 : index
    %c0_14 = arith.constant 0 : index
    %19 = vector.load %arg5[%c2, %c0_14] : memref<3x128xf32, #tpu.memory_space<vmem>>, vector<1x128xf32>
    %20 = vector.broadcast %19 : vector<1x128xf32> to vector<256x128xf32>
    %21 = arith.addf %18, %20 : vector<256x128xf32>
    %c0_15 = arith.constant 0 : index
    %c0_16 = arith.constant 0 : index
    %22 = vector.load %arg6[%c0_15, %c0_16] : memref<256x128xf32, #tpu.memory_space<vmem>>, vector<256x128xf32>
    tpu.vector_store %arg6[%c0_15, %c0_16], %21 {strides = array<i32>} : memref<256x128xf32, #tpu.memory_space<vmem>>, vector<256x128xf32>,
    return
  }
  func.func @transform_0(%arg0: i32) -> (i32, i32) {
    %c0_i32 = arith.constant 0 : i32
    %c0_i32_0 = arith.constant 0 : i32
    return %arg0, %c0_i32 : i32, i32
  }
  func.func @transform_1(%arg0: i32) -> (i32, i32) {
    %c0_i32 = arith.constant 0 : i32
    %c0_i32_0 = arith.constant 0 : i32
    %c0_i32_1 = arith.constant 0 : i32
    return %c0_i32, %c0_i32_0 : i32, i32
  }
  func.func @transform_2(%arg0: i32) -> (i32, i32) {
    %c0_i32 = arith.constant 0 : i32
    %c0_i32_0 = arith.constant 0 : i32
    %c0_i32_1 = arith.constant 0 : i32
    return %c0_i32, %c0_i32_0 : i32, i32
  }
  func.func @transform_3(%arg0: i32) -> (i32, i32) {
    %c0_i32 = arith.constant 0 : i32
    %c0_i32_0 = arith.constant 0 : i32
    %c0_i32_1 = arith.constant 0 : i32
    return %c0_i32, %c0_i32_0 : i32, i32
  }
  func.func @transform_4(%arg0: i32) -> (i32, i32) {
    %c0_i32 = arith.constant 0 : i32
    %c0_i32_0 = arith.constant 0 : i32
    %c0_i32_1 = arith.constant 0 : i32
    return %c0_i32, %c0_i32_0 : i32, i32
  }
  func.func @transform_5(%arg0: i32) -> (i32, i32) {
    %c0_i32 = arith.constant 0 : i32
    %c0_i32_0 = arith.constant 0 : i32
    return %arg0, %c0_i32 : i32, i32
  }
}

</mosaic_0001>

<bundles_post_ra>
// kernel: _dqn_forward_impl.1
= control target key start
LH: loop header
LB: loop body
LE: loop exit
PB: predicated region body
PF: predicated region fallthrough
CT: control target
= control target key end

     0   :  { %s1329_s1 = inlined_call_operand.vmem [shape: bf16[128,128], index: 1, kind: input, shape index: {}]   ;;  %s1330_s4 = inlined_call_operand.vmem [shape: f32[3,128], index: 4, kind: input, shape index: {}]   ;;  %s1331_s0 = inlined_call_operand.vmem [shape: bf16[256,128], index: 0, kind: input, shape index: {}]   ;;  %s1332_s2 = inlined_call_operand.vmem [shape: bf16[128,128], index: 2, kind: input, shape index: {}]   ;;  %s1333_s3 = inlined_call_operand.vmem [shape: bf16[128,128], index: 3, kind: input, shape index: {}]   ;;  %s1334_s5 = inlined_call_operand.vmem [shape: f32[256,128], index: 5, kind: output, shape index: {}]  }
   0x1   :  { %v928_v0 = vld [vmem:[%s1329_s1 + $0x38] sm:$0xff]  ;;  %v927_v1 = vld [vmem:[%s1329_s1 + $0x30] sm:$0xff]  ;;  %v926_v2 = vld [vmem:[%s1329_s1 + $0x28] sm:$0xff] }
   0x2   :  { %214 = vmatpush.bf16.msra.mxu0 %v928_v0  ;;  %945 = vmatpush.bf16.msra.mxu3 %v928_v0  ;;  %v925_v3 = vld [vmem:[%s1329_s1 + $0x20] sm:$0xff]  ;;  %v924_v4 = vld [vmem:[%s1329_s1 + $0x18] sm:$0xff]  ;;  %v923_v5 = vld [vmem:[%s1329_s1 + $0x10] sm:$0xff] }
   0x3   :  { %v922_v6 = vld [vmem:[%s1329_s1 + $0x8] sm:$0xff]  ;;  %v921_v7 = vld [vmem:[%s1329_s1] sm:$0xff]  ;;  %v907_v10 = vld [vmem:[%s1331_s0 + $0x10] sm:$0xff] }
   0x4   :  { %v905_v8 = vld [vmem:[%s1331_s0] sm:$0xff]  ;;  %v906_v9 = vld [vmem:[%s1331_s0 + $0x8] sm:$0xff]  ;;  %v908_v11 = vld [vmem:[%s1331_s0 + $0x18] sm:$0xff] }
   0x5   :  { %v917_v12 = vld [vmem:[%s1331_s0 + $0x60] sm:$0xff]  ;;  %v918_v14 = vld [vmem:[%s1331_s0 + $0x68] sm:$0xff]  ;;  %v936_v15 = vld [vmem:[%s1332_s2 + $0x38] sm:$0xff] }
   0x6   :  { %215 = vmatpush.bf16.msra.mxu0 %v927_v1  ;;  %946 = vmatpush.bf16.msra.mxu3 %v927_v1  ;;  %v909_v13 = vld [vmem:[%s1331_s0 + $0x20] sm:$0xff]  ;;  %v910_v16 = vld [vmem:[%s1331_s0 + $0x28] sm:$0xff]  ;;  %v935_v17 = vld [vmem:[%s1332_s2 + $0x30] sm:$0xff] }
   0x7   :  { %417 = vmatpush.bf16.msra.mxu1 %v936_v15  ;;  %v919_v18 = vld [vmem:[%s1331_s0 + $0x70] sm:$0xff]  ;;  %v934_v19 = vld [vmem:[%s1332_s2 + $0x28] sm:$0xff]  ;;  %v933_v20 = vld [vmem:[%s1332_s2 + $0x20] sm:$0xff] }
   0x8   :  { %v932_v21 = vld [vmem:[%s1332_s2 + $0x18] sm:$0xff]  ;;  %v911_v22 = vld [vmem:[%s1331_s0 + $0x30] sm:$0xff]  ;;  %v930_v24 = vld [vmem:[%s1332_s2 + $0x8] sm:$0xff] }
   0x9   :  { %v931_v23 = vld [vmem:[%s1332_s2 + $0x10] sm:$0xff]  ;;  %v929_v25 = vld [vmem:[%s1332_s2] sm:$0xff]  ;;  %v920_v26 = vld [vmem:[%s1331_s0 + $0x78] sm:$0xff] }
   0xa   :  { %216 = vmatpush.bf16.msra.mxu0 %v926_v2  ;;  %947 = vmatpush.bf16.msra.mxu3 %v926_v2  ;;  %v912_v27 = vld [vmem:[%s1331_s0 + $0x38] sm:$0xff]  ;;  %v913_v28 = vld [vmem:[%s1331_s0 + $0x40] sm:$0xff]  ;;  %v914_v37 = vld [vmem:[%s1331_s0 + $0x48] sm:$0xff] }
   0xb   :  { %418 = vmatpush.bf16.msra.mxu1 %v935_v17  ;;  %v1092_v30 = vld [vmem:[%s1330_s4] ss:$0 sm:$0xff]  ;;  %v915_v45 = vld [vmem:[%s1331_s0 + $0x50] sm:$0xff]  ;;  %v916_v53 = vld [vmem:[%s1331_s0 + $0x58] sm:$0xff] }
   0xe   :  { %217 = vmatpush.bf16.msra.mxu0 %v925_v3  ;;  %948 = vmatpush.bf16.msra.mxu3 %v925_v3 }
   0xf   :  { %419 = vmatpush.bf16.msra.mxu1 %v934_v19 }
  0x12   :  { %218 = vmatpush.bf16.msra.mxu0 %v924_v4  ;;  %949 = vmatpush.bf16.msra.mxu3 %v924_v4 }
  0x13   :  { %420 = vmatpush.bf16.msra.mxu1 %v933_v20 }
  0x16   :  { %219 = vmatpush.bf16.msra.mxu0 %v923_v5  ;;  %950 = vmatpush.bf16.msra.mxu3 %v923_v5 }
  0x17   :  { %421 = vmatpush.bf16.msra.mxu1 %v932_v21 }
  0x1a   :  { %220 = vmatpush.bf16.msra.mxu0 %v922_v6  ;;  %951 = vmatpush.bf16.msra.mxu3 %v922_v6 }
  0x1b   :  { %422 = vmatpush.bf16.msra.mxu1 %v931_v23 }
  0x1e   :  { %221 = vmatpush.bf16.msra.mxu0 %v921_v7  ;;  %952 = vmatpush.bf16.msra.mxu3 %v921_v7 }
  0x1f   :  { %423 = vmatpush.bf16.msra.mxu1 %v930_v24 }
  0x21   :  { %222 = vmatmul.bf16.vlgmr.msra.gmra.mxu0 %v905_v8  ;;  %282 = vmatmul.bf16.vlgmr.msra.gmra.mxu3 %v917_v12 }
  0x22   :  { %953 = vmatpush.bf16.msrb.mxu3 %v936_v15 }
  0x23   :  { %424 = vmatpush.bf16.msra.mxu1 %v929_v25 }
  0x26   :  { %954 = vmatpush.bf16.msrb.mxu3 %v935_v17 }
  0x2a   :  { %955 = vmatpush.bf16.msrb.mxu3 %v934_v19 }
  0x2e   :  { %956 = vmatpush.bf16.msrb.mxu3 %v933_v20 }
  0x31   :  { %227 = vmatmul.bf16.gmra.mxu0 %v906_v9  ;;  %287 = vmatmul.bf16.gmra.mxu3 %v918_v14 }
  0x32   :  { %957 = vmatpush.bf16.msrb.mxu3 %v932_v21 }
  0x36   :  { %958 = vmatpush.bf16.msrb.mxu3 %v931_v23 }
  0x3a   :  { %959 = vmatpush.bf16.msrb.mxu3 %v930_v24 }
  0x3e   :  { %960 = vmatpush.bf16.msrb.mxu3 %v929_v25  ;;  %v943_v25 = vld [vmem:[%s1333_s3 + $0x30] sm:$0xff] }
  0x41   :  { %232 = vmatmul.bf16.gmra.mxu0 %v907_v10  ;;  %292 = vmatmul.bf16.gmra.mxu3 %v919_v18  ;;  %v944_v18 = vld [vmem:[%s1333_s3 + $0x38] sm:$0xff] }
  0x42   :  { %620 = vmatpush.bf16.msra.mxu2 %v944_v18  ;;  %961 = vmatpush.bf16.msra.mxu3 %v944_v18 }
  0x46   :  { %621 = vmatpush.bf16.msra.mxu2 %v943_v25  ;;  %962 = vmatpush.bf16.msra.mxu3 %v943_v25 }
  0x51   :  { %237 = vmatmul.bf16.gmra.mxu0 %v908_v11  ;;  %297 = vmatmul.bf16.gmra.mxu3 %v920_v26 }
  0x61   :  { %242 = vmatmul.bf16.gmra.mxu0 %v909_v13 }
  0x71   :  { %247 = vmatmul.bf16.gmra.mxu0 %v910_v16 }
  0x81   :  { %252 = vmatmul.bf16.gmra.mxu0 %v911_v22 }
  0x91   :  { %257 = vmatmul.bf16.gmra.mxu0 %v912_v27 }
  0x9e   :  { %v223_v29 = vpop.f32.mrf.mxu0 }
  0x9f   :  { %v224_v31 = vadd.f32 %v1092_v30, %v223_v29  ;;  %v942_v29 = vld [vmem:[%s1333_s3 + $0x28] sm:$0xff] }
  0xa0   :  { %622 = vmatpush.bf16.msra.mxu2 %v942_v29  ;;  %963 = vmatpush.bf16.msra.mxu3 %v942_v29 }
  0xa1   :  { %262 = vmatmul.bf16.gmra.mxu0 %v913_v28  ;;  %v303_v34 = vmax.f32 %v224_v31, 0.0  ;;  %v941_v31 = vld [vmem:[%s1333_s3 + $0x20] sm:$0xff] }
  0xa4   :  { %v283_v62 = vpop.f32.mrf.mxu3  ;;  %623 = vmatpush.bf16.msra.mxu2 %v941_v31  ;;  %964 = vmatpush.bf16.msra.mxu3 %v941_v31 }
  0xa5   :  { %v284_v0 = vadd.f32 %v1092_v30, %v283_v62 }
  0xa6   :  { %v225_v32 = vpop.f32.mrf.mxu0 }
  0xa7   :  { %v226_v33 = vadd.f32 %v1092_v30, %v225_v32  ;;  %v327_v6 = vmax.f32 %v284_v0, 0.0 }
  0xa9   :  { %v304_v35 = vmax.f32 %v226_v33, 0.0 }
  0xab   :  { %v335_v36 = vpack.c.bf16 %v304_v35, %v303_v34 }
  0xac   :  { %v285_v3 = vpop.f32.mrf.mxu3 }
  0xad   :  { %425 = vmatmul.bf16.vlgmr.msra.gmra.mxu1 %v335_v36  ;;  %v286_v7 = vadd.f32 %v1092_v30, %v285_v3 }
  0xae   :  { %v228_v38 = vpop.f32.mrf.mxu0 }
  0xaf   :  { %v229_v39 = vadd.f32 %v1092_v30, %v228_v38  ;;  %v328_v9 = vmax.f32 %v286_v7, 0.0 }
  0xb1   :  { %267 = vmatmul.bf16.gmra.mxu0 %v914_v37  ;;  %v305_v42 = vmax.f32 %v229_v39, 0.0  ;;  %v347_v10 = vpack.c.bf16 %v328_v9, %v327_v6  ;;  %v940_v37 = vld [vmem:[%s1333_s3 + $0x18] sm:$0xff]  ;;  %v1156_v6 = vld [vmem:[%s1330_s4 + $0x1] ss:$0 sm:$0xff] }
  0xb2   :  { %624 = vmatpush.bf16.msra.mxu2 %v940_v37  ;;  %965 = vmatpush.bf16.msra.mxu3 %v940_v37 }
  0xb3   :  { %485 = vmatmul.bf16.vlgmr.msrb.gmra.mxu3 %v347_v10 }
  0xb4   :  { %v288_v12 = vpop.f32.mrf.mxu3 }
  0xb5   :  { %v289_v14 = vadd.f32 %v1092_v30, %v288_v12 }
  0xb6   :  { %v230_v40 = vpop.f32.mrf.mxu0 }
  0xb7   :  { %v231_v41 = vadd.f32 %v1092_v30, %v230_v40  ;;  %v329_v21 = vmax.f32 %v289_v14, 0.0 }
  0xb9   :  { %v306_v43 = vmax.f32 %v231_v41, 0.0 }
  0xbb   :  { %v336_v44 = vpack.c.bf16 %v306_v43, %v305_v42 }
  0xbc   :  { %v290_v17 = vpop.f32.mrf.mxu3 }
  0xbd   :  { %430 = vmatmul.bf16.gmra.mxu1 %v336_v44  ;;  %v291_v22 = vadd.f32 %v1092_v30, %v290_v17  ;;  %v939_v44 = vld [vmem:[%s1333_s3 + $0x10] sm:$0xff] }
  0xbe   :  { %v233_v46 = vpop.f32.mrf.mxu0  ;;  %625 = vmatpush.bf16.msra.mxu2 %v939_v44  ;;  %966 = vmatpush.bf16.msra.mxu3 %v939_v44 }
  0xbf   :  { %v234_v47 = vadd.f32 %v1092_v30, %v233_v46  ;;  %v330_v24 = vmax.f32 %v291_v22, 0.0 }
  0xc1   :  { %272 = vmatmul.bf16.gmra.mxu0 %v915_v45  ;;  %v307_v50 = vmax.f32 %v234_v47, 0.0  ;;  %v348_v26 = vpack.c.bf16 %v330_v24, %v329_v21 }
  0xc3   :  { %490 = vmatmul.bf16.gmra.mxu3 %v348_v26 }
  0xc4   :  { %v293_v28 = vpop.f32.mrf.mxu3 }
  0xc5   :  { %v294_v33 = vadd.f32 %v1092_v30, %v293_v28 }
  0xc6   :  { %v235_v48 = vpop.f32.mrf.mxu0 }
  0xc7   :  { %v236_v49 = vadd.f32 %v1092_v30, %v235_v48  ;;  %v331_v40 = vmax.f32 %v294_v33, 0.0  ;;  %v938_v48 = vld [vmem:[%s1333_s3 + $0x8] sm:$0xff] }
  0xc8   :  { %626 = vmatpush.bf16.msra.mxu2 %v938_v48  ;;  %967 = vmatpush.bf16.msra.mxu3 %v938_v48 }
  0xc9   :  { %v308_v51 = vmax.f32 %v236_v49, 0.0  ;;  %v937_v49 = vld [vmem:[%s1333_s3] sm:$0xff] }
  0xcb   :  { %v337_v52 = vpack.c.bf16 %v308_v51, %v307_v50 }
  0xcc   :  { %v295_v36 = vpop.f32.mrf.mxu3  ;;  %627 = vmatpush.bf16.msra.mxu2 %v937_v49  ;;  %968 = vmatpush.bf16.msra.mxu3 %v937_v49 }
  0xcd   :  { %435 = vmatmul.bf16.gmra.mxu1 %v337_v52  ;;  %v296_v41 = vadd.f32 %v1092_v30, %v295_v36 }
  0xce   :  { %v238_v54 = vpop.f32.mrf.mxu0 }
  0xcf   :  { %v239_v55 = vadd.f32 %v1092_v30, %v238_v54  ;;  %v332_v43 = vmax.f32 %v296_v41, 0.0 }
  0xd1   :  { %277 = vmatmul.bf16.gmra.mxu0 %v916_v53  ;;  %v309_v58 = vmax.f32 %v239_v55, 0.0  ;;  %v349_v45 = vpack.c.bf16 %v332_v43, %v331_v40 }
  0xd3   :  { %495 = vmatmul.bf16.gmra.mxu3 %v349_v45 }
  0xd4   :  { %v298_v47 = vpop.f32.mrf.mxu3 }
  0xd5   :  { %v299_v51 = vadd.f32 %v1092_v30, %v298_v47 }
  0xd6   :  { %v240_v56 = vpop.f32.mrf.mxu0 }
  0xd7   :  { %v241_v57 = vadd.f32 %v1092_v30, %v240_v56 }
  0xd9   :  { %v310_v59 = vmax.f32 %v241_v57, 0.0  ;;  %v333_v57 = vmax.f32 %v299_v51, 0.0 }
  0xdb   :  { %v338_v60 = vpack.c.bf16 %v310_v59, %v309_v58 }
  0xdc   :  { %v300_v54 = vpop.f32.mrf.mxu3 }
  0xdd   :  { %440 = vmatmul.bf16.gmra.mxu1 %v338_v60  ;;  %v301_v58 = vadd.f32 %v1092_v30, %v300_v54 }
  0xde   :  { %v243_v61 = vpop.f32.mrf.mxu0 }
  0xdf   :  { %v244_v63 = vadd.f32 %v1092_v30, %v243_v61  ;;  %v334_v60 = vmax.f32 %v301_v58, 0.0 }
  0xe1   :  { %v311_v4 = vmax.f32 %v244_v63, 0.0  ;;  %v350_v61 = vpack.c.bf16 %v334_v60, %v333_v57 }
  0xe3   :  { %500 = vmatmul.bf16.gmra.mxu3 %v350_v61 }
  0xe6   :  { %v245_v1 = vpop.f32.mrf.mxu0 }
  0xe7   :  { %v246_v2 = vadd.f32 %v1092_v30, %v245_v1 }
  0xe9   :  { %v312_v5 = vmax.f32 %v246_v2, 0.0 }
  0xeb   :  { %v339_v8 = vpack.c.bf16 %v312_v5, %v311_v4 }
  0xed   :  { %445 = vmatmul.bf16.gmra.mxu1 %v339_v8 }
  0xee   :  { %v248_v11 = vpop.f32.mrf.mxu0 }
  0xef   :  { %v249_v13 = vadd.f32 %v1092_v30, %v248_v11 }
  0xf1   :  { %v313_v19 = vmax.f32 %v249_v13, 0.0 }
  0xf6   :  { %v250_v15 = vpop.f32.mrf.mxu0 }
  0xf7   :  { %v251_v16 = vadd.f32 %v1092_v30, %v250_v15 }
  0xf9   :  { %v314_v20 = vmax.f32 %v251_v16, 0.0 }
  0xfb   :  { %v340_v23 = vpack.c.bf16 %v314_v20, %v313_v19 }
  0xfd   :  { %450 = vmatmul.bf16.gmra.mxu1 %v340_v23 }
  0xfe   :  { %v253_v27 = vpop.f32.mrf.mxu0 }
  0xff   :  { %v254_v32 = vadd.f32 %v1092_v30, %v253_v27 }
 0x101   :  { %v315_v38 = vmax.f32 %v254_v32, 0.0 }
 0x106   :  { %v255_v34 = vpop.f32.mrf.mxu0 }
 0x107   :  { %v256_v35 = vadd.f32 %v1092_v30, %v255_v34 }
 0x109   :  { %v316_v39 = vmax.f32 %v256_v35, 0.0 }
 0x10b   :  { %v341_v42 = vpack.c.bf16 %v316_v39, %v315_v38 }
 0x10d   :  { %455 = vmatmul.bf16.gmra.mxu1 %v341_v42 }
 0x10e   :  { %v258_v46 = vpop.f32.mrf.mxu0 }
 0x10f   :  { %v259_v50 = vadd.f32 %v1092_v30, %v258_v46 }
 0x111   :  { %v317_v55 = vmax.f32 %v259_v50, 0.0 }
 0x116   :  { %v260_v52 = vpop.f32.mrf.mxu0 }
 0x117   :  { %v261_v53 = vadd.f32 %v1092_v30, %v260_v52 }
 0x119   :  { %v318_v56 = vmax.f32 %v261_v53, 0.0 }
 0x11b   :  { %v342_v59 = vpack.c.bf16 %v318_v56, %v317_v55 }
 0x11d   :  { %460 = vmatmul.bf16.gmra.mxu1 %v342_v59 }
 0x11e   :  { %v263_v62 = vpop.f32.mrf.mxu0 }
 0x11f   :  { %v264_v63 = vadd.f32 %v1092_v30, %v263_v62 }
 0x121   :  { %v319_v2 = vmax.f32 %v264_v63, 0.0 }
 0x126   :  { %v265_v0 = vpop.f32.mrf.mxu0 }
 0x127   :  { %v266_v1 = vadd.f32 %v1092_v30, %v265_v0 }
 0x129   :  { %v320_v3 = vmax.f32 %v266_v1, 0.0 }
 0x12a   :  { %v426_v4 = vpop.f32.mrf.mxu1 }
 0x12b   :  { %v343_v5 = vpack.c.bf16 %v320_v3, %v319_v2  ;;  %v427_v8 = vadd.f32 %v1156_v6, %v426_v4 }
 0x12d   :  { %465 = vmatmul.bf16.gmra.mxu1 %v343_v5  ;;  %v506_v11 = vmax.f32 %v427_v8, 0.0 }
 0x12e   :  { %v268_v7 = vpop.f32.mrf.mxu0 }
 0x12f   :  { %v269_v12 = vadd.f32 %v1092_v30, %v268_v7 }
 0x131   :  { %v321_v17 = vmax.f32 %v269_v12, 0.0 }
 0x132   :  { %v428_v9 = vpop.f32.mrf.mxu1 }
 0x133   :  { %v429_v10 = vadd.f32 %v1156_v6, %v428_v9 }
 0x135   :  { %v507_v13 = vmax.f32 %v429_v10, 0.0 }
 0x136   :  { %v270_v14 = vpop.f32.mrf.mxu0  ;;  %v486_v58 = vpop.f32.mrf.mxu3 }
 0x137   :  { %v271_v15 = vadd.f32 %v1092_v30, %v270_v14  ;;  %v538_v16 = vpack.c.bf16 %v507_v13, %v506_v11  ;;  %v487_v63 = vadd.f32 %v1156_v6, %v486_v58 }
 0x139   :  { %v322_v18 = vmax.f32 %v271_v15, 0.0  ;;  %628 = vmatmul.bf16.vlgmr.msra.gmra.mxu2 %v538_v16  ;;  %v530_v2 = vmax.f32 %v487_v63, 0.0 }
 0x13a   :  { %v431_v19 = vpop.f32.mrf.mxu1 }
 0x13b   :  { %v344_v20 = vpack.c.bf16 %v322_v18, %v321_v17  ;;  %v432_v22 = vadd.f32 %v1156_v6, %v431_v19 }
 0x13d   :  { %470 = vmatmul.bf16.gmra.mxu1 %v344_v20  ;;  %v508_v25 = vmax.f32 %v432_v22, 0.0 }
 0x13e   :  { %v273_v21 = vpop.f32.mrf.mxu0  ;;  %v488_v1 = vpop.f32.mrf.mxu3 }
 0x13f   :  { %v274_v26 = vadd.f32 %v1092_v30, %v273_v21  ;;  %v489_v3 = vadd.f32 %v1156_v6, %v488_v1 }
 0x141   :  { %v323_v32 = vmax.f32 %v274_v26, 0.0  ;;  %v531_v4 = vmax.f32 %v489_v3, 0.0 }
 0x142   :  { %v433_v23 = vpop.f32.mrf.mxu1 }
 0x143   :  { %v434_v24 = vadd.f32 %v1156_v6, %v433_v23  ;;  %v550_v5 = vpack.c.bf16 %v531_v4, %v530_v2 }
 0x145   :  { %v509_v27 = vmax.f32 %v434_v24, 0.0  ;;  %688 = vmatmul.bf16.vlgmr.msra.gmra.mxu3 %v550_v5 }
 0x146   :  { %v275_v28 = vpop.f32.mrf.mxu0  ;;  %v491_v9 = vpop.f32.mrf.mxu3 }
 0x147   :  { %v276_v29 = vadd.f32 %v1092_v30, %v275_v28  ;;  %v539_v31 = vpack.c.bf16 %v509_v27, %v508_v25  ;;  %v492_v14 = vadd.f32 %v1156_v6, %v491_v9 }
 0x149   :  { %v324_v33 = vmax.f32 %v276_v29, 0.0  ;;  %633 = vmatmul.bf16.gmra.mxu2 %v539_v31  ;;  %v532_v17 = vmax.f32 %v492_v14, 0.0 }
 0x14a   :  { %v436_v34 = vpop.f32.mrf.mxu1 }
 0x14b   :  { %v345_v35 = vpack.c.bf16 %v324_v33, %v323_v32  ;;  %v437_v37 = vadd.f32 %v1156_v6, %v436_v34 }
 0x14d   :  { %475 = vmatmul.bf16.gmra.mxu1 %v345_v35  ;;  %v510_v40 = vmax.f32 %v437_v37, 0.0 }
 0x14e   :  { %v278_v36 = vpop.f32.mrf.mxu0  ;;  %v493_v16 = vpop.f32.mrf.mxu3 }
 0x14f   :  { %v279_v41 = vadd.f32 %v1092_v30, %v278_v36  ;;  %v494_v18 = vadd.f32 %v1156_v6, %v493_v16 }
 0x151   :  { %v325_v46 = vmax.f32 %v279_v41, 0.0  ;;  %v533_v19 = vmax.f32 %v494_v18, 0.0 }
 0x152   :  { %v438_v38 = vpop.f32.mrf.mxu1 }
 0x153   :  { %v439_v39 = vadd.f32 %v1156_v6, %v438_v38  ;;  %v551_v20 = vpack.c.bf16 %v533_v19, %v532_v17 }
 0x155   :  { %v511_v42 = vmax.f32 %v439_v39, 0.0  ;;  %693 = vmatmul.bf16.gmra.mxu3 %v551_v20 }
 0x156   :  { %v280_v43 = vpop.f32.mrf.mxu0  ;;  %v496_v23 = vpop.f32.mrf.mxu3 }
 0x157   :  { %v281_v44 = vadd.f32 %v1092_v30, %v280_v43  ;;  %v540_v45 = vpack.c.bf16 %v511_v42, %v510_v40  ;;  %v497_v28 = vadd.f32 %v1156_v6, %v496_v23 }
 0x159   :  { %v326_v47 = vmax.f32 %v281_v44, 0.0  ;;  %638 = vmatmul.bf16.gmra.mxu2 %v540_v45  ;;  %v534_v32 = vmax.f32 %v497_v28, 0.0 }
 0x15a   :  { %v441_v48 = vpop.f32.mrf.mxu1 }
 0x15b   :  { %v346_v49 = vpack.c.bf16 %v326_v47, %v325_v46  ;;  %v442_v50 = vadd.f32 %v1156_v6, %v441_v48 }
 0x15d   :  { %480 = vmatmul.bf16.gmra.mxu1 %v346_v49  ;;  %v512_v53 = vmax.f32 %v442_v50, 0.0 }
 0x15e   :  { %v498_v31 = vpop.f32.mrf.mxu3 }
 0x15f   :  { %v499_v33 = vadd.f32 %v1156_v6, %v498_v31 }
 0x161   :  { %v535_v34 = vmax.f32 %v499_v33, 0.0 }
 0x162   :  { %v443_v51 = vpop.f32.mrf.mxu1 }
 0x163   :  { %v444_v52 = vadd.f32 %v1156_v6, %v443_v51  ;;  %v552_v35 = vpack.c.bf16 %v535_v34, %v534_v32 }
 0x165   :  { %v513_v54 = vmax.f32 %v444_v52, 0.0  ;;  %698 = vmatmul.bf16.gmra.mxu3 %v552_v35 }
 0x166   :  { %v501_v38 = vpop.f32.mrf.mxu3 }
 0x167   :  { %v541_v55 = vpack.c.bf16 %v513_v54, %v512_v53  ;;  %v502_v43 = vadd.f32 %v1156_v6, %v501_v38 }
 0x169   :  { %643 = vmatmul.bf16.gmra.mxu2 %v541_v55  ;;  %v536_v46 = vmax.f32 %v502_v43, 0.0 }
 0x16a   :  { %v446_v56 = vpop.f32.mrf.mxu1 }
 0x16b   :  { %v447_v57 = vadd.f32 %v1156_v6, %v446_v56  ;;  %v1193_v56 = vld [vmem:[%s1330_s4 + $0x2] ss:$0 sm:$0xff] }
 0x16d   :  { %v514_v60 = vmax.f32 %v447_v57, 0.0 }
 0x16e   :  { %v503_v45 = vpop.f32.mrf.mxu3 }
 0x16f   :  { %v504_v47 = vadd.f32 %v1156_v6, %v503_v45 }
 0x171   :  { %v537_v48 = vmax.f32 %v504_v47, 0.0 }
 0x172   :  { %v448_v30 = vpop.f32.mrf.mxu1 }
 0x173   :  { %v449_v59 = vadd.f32 %v1156_v6, %v448_v30  ;;  %v553_v49 = vpack.c.bf16 %v537_v48, %v536_v46 }
 0x175   :  { %v515_v61 = vmax.f32 %v449_v59, 0.0  ;;  %703 = vmatmul.bf16.gmra.mxu3 %v553_v49 }
 0x177   :  { %v542_v62 = vpack.c.bf16 %v515_v61, %v514_v60 }
 0x179   :  { %648 = vmatmul.bf16.gmra.mxu2 %v542_v62 }
 0x17a   :  { %v451_v0 = vpop.f32.mrf.mxu1 }
 0x17b   :  { %v452_v7 = vadd.f32 %v1156_v6, %v451_v0 }
 0x17d   :  { %v516_v11 = vmax.f32 %v452_v7, 0.0 }
 0x182   :  { %v453_v8 = vpop.f32.mrf.mxu1 }
 0x183   :  { %v454_v10 = vadd.f32 %v1156_v6, %v453_v8 }
 0x185   :  { %v517_v12 = vmax.f32 %v454_v10, 0.0 }
 0x187   :  { %v543_v13 = vpack.c.bf16 %v517_v12, %v516_v11 }
 0x189   :  { %653 = vmatmul.bf16.gmra.mxu2 %v543_v13 }
 0x18a   :  { %v456_v15 = vpop.f32.mrf.mxu1 }
 0x18b   :  { %v457_v21 = vadd.f32 %v1156_v6, %v456_v15 }
 0x18d   :  { %v518_v25 = vmax.f32 %v457_v21, 0.0 }
 0x192   :  { %v458_v22 = vpop.f32.mrf.mxu1 }
 0x193   :  { %v459_v24 = vadd.f32 %v1156_v6, %v458_v22 }
 0x195   :  { %v519_v26 = vmax.f32 %v459_v24, 0.0 }
 0x197   :  { %v544_v27 = vpack.c.bf16 %v519_v26, %v518_v25 }
 0x199   :  { %658 = vmatmul.bf16.gmra.mxu2 %v544_v27 }
 0x19a   :  { %v461_v29 = vpop.f32.mrf.mxu1 }
 0x19b   :  { %v462_v36 = vadd.f32 %v1156_v6, %v461_v29 }
 0x19d   :  { %v520_v40 = vmax.f32 %v462_v36, 0.0 }
 0x1a2   :  { %v463_v37 = vpop.f32.mrf.mxu1 }
 0x1a3   :  { %v464_v39 = vadd.f32 %v1156_v6, %v463_v37 }
 0x1a5   :  { %v521_v41 = vmax.f32 %v464_v39, 0.0 }
 0x1a7   :  { %v545_v42 = vpack.c.bf16 %v521_v41, %v520_v40 }
 0x1a9   :  { %663 = vmatmul.bf16.gmra.mxu2 %v545_v42 }
 0x1aa   :  { %v466_v44 = vpop.f32.mrf.mxu1 }
 0x1ab   :  { %v467_v50 = vadd.f32 %v1156_v6, %v466_v44 }
 0x1ad   :  { %v522_v53 = vmax.f32 %v467_v50, 0.0 }
 0x1b2   :  { %v468_v51 = vpop.f32.mrf.mxu1 }
 0x1b3   :  { %v469_v52 = vadd.f32 %v1156_v6, %v468_v51 }
 0x1b5   :  { %v523_v54 = vmax.f32 %v469_v52, 0.0 }
 0x1b7   :  { %v546_v55 = vpack.c.bf16 %v523_v54, %v522_v53 }
 0x1b9   :  { %668 = vmatmul.bf16.gmra.mxu2 %v546_v55 }
 0x1ba   :  { %v471_v57 = vpop.f32.mrf.mxu1 }
 0x1bb   :  { %v472_v59 = vadd.f32 %v1156_v6, %v471_v57 }
 0x1bc   :  { %v629_v30 = vpop.f32.mrf.mxu2 }
 0x1bd   :  { %v630_v58 = vadd.f32 %v1193_v56, %v629_v30  ;;  %v524_v63 = vmax.f32 %v472_v59, 0.0 }
 0x1bf   :  { %709 = vst [vmem:[%s1334_s5] sm:$0xff] %v630_v58 }
 0x1c2   :  { %v473_v60 = vpop.f32.mrf.mxu1 }
 0x1c3   :  { %v474_v61 = vadd.f32 %v1156_v6, %v473_v60 }
 0x1c4   :  { %v631_v62 = vpop.f32.mrf.mxu2 }
 0x1c5   :  { %v525_v0 = vmax.f32 %v474_v61, 0.0  ;;  %v632_v1 = vadd.f32 %v1193_v56, %v631_v62 }
 0x1c7   :  { %710 = vst [vmem:[%s1334_s5 + $0x8] sm:$0xff] %v632_v1  ;;  %v547_v2 = vpack.c.bf16 %v525_v0, %v524_v63 }
 0x1c8   :  { %v689_v33 = vpop.f32.mrf.mxu3 }
 0x1c9   :  { %673 = vmatmul.bf16.gmra.mxu2 %v547_v2  ;;  %v690_v35 = vadd.f32 %v1193_v56, %v689_v33 }
 0x1ca   :  { %v476_v3 = vpop.f32.mrf.mxu1 }
 0x1cb   :  { %v477_v7 = vadd.f32 %v1156_v6, %v476_v3  ;;  %733 = vst [vmem:[%s1334_s5 + $0xc0] sm:$0xff] %v690_v35 }
 0x1cc   :  { %v634_v4 = vpop.f32.mrf.mxu2 }
 0x1cd   :  { %v635_v5 = vadd.f32 %v1193_v56, %v634_v4  ;;  %v526_v11 = vmax.f32 %v477_v7, 0.0 }
 0x1cf   :  { %711 = vst [vmem:[%s1334_s5 + $0x10] sm:$0xff] %v635_v5 }
 0x1d0   :  { %v691_v37 = vpop.f32.mrf.mxu3 }
 0x1d1   :  { %v692_v39 = vadd.f32 %v1193_v56, %v691_v37 }
 0x1d2   :  { %v478_v8 = vpop.f32.mrf.mxu1 }
 0x1d3   :  { %v479_v9 = vadd.f32 %v1156_v6, %v478_v8  ;;  %734 = vst [vmem:[%s1334_s5 + $0xc8] sm:$0xff] %v692_v39 }
 0x1d4   :  { %v636_v10 = vpop.f32.mrf.mxu2 }
 0x1d5   :  { %v527_v12 = vmax.f32 %v479_v9, 0.0  ;;  %v637_v13 = vadd.f32 %v1193_v56, %v636_v10 }
 0x1d7   :  { %712 = vst [vmem:[%s1334_s5 + $0x18] sm:$0xff] %v637_v13  ;;  %v548_v14 = vpack.c.bf16 %v527_v12, %v526_v11 }
 0x1d8   :  { %v694_v41 = vpop.f32.mrf.mxu3 }
 0x1d9   :  { %678 = vmatmul.bf16.gmra.mxu2 %v548_v14  ;;  %v695_v43 = vadd.f32 %v1193_v56, %v694_v41 }
 0x1da   :  { %v481_v15 = vpop.f32.mrf.mxu1 }
 0x1db   :  { %v482_v18 = vadd.f32 %v1156_v6, %v481_v15  ;;  %735 = vst [vmem:[%s1334_s5 + $0xd0] sm:$0xff] %v695_v43 }
 0x1dc   :  { %v639_v16 = vpop.f32.mrf.mxu2 }
 0x1dd   :  { %v640_v17 = vadd.f32 %v1193_v56, %v639_v16  ;;  %v528_v22 = vmax.f32 %v482_v18, 0.0 }
 0x1df   :  { %713 = vst [vmem:[%s1334_s5 + $0x20] sm:$0xff] %v640_v17 }
 0x1e0   :  { %v696_v45 = vpop.f32.mrf.mxu3 }
 0x1e1   :  { %v697_v47 = vadd.f32 %v1193_v56, %v696_v45 }
 0x1e2   :  { %v483_v19 = vpop.f32.mrf.mxu1 }
 0x1e3   :  { %v484_v20 = vadd.f32 %v1156_v6, %v483_v19  ;;  %736 = vst [vmem:[%s1334_s5 + $0xd8] sm:$0xff] %v697_v47 }
 0x1e4   :  { %v641_v21 = vpop.f32.mrf.mxu2 }
 0x1e5   :  { %v529_v23 = vmax.f32 %v484_v20, 0.0  ;;  %v642_v24 = vadd.f32 %v1193_v56, %v641_v21 }
 0x1e7   :  { %714 = vst [vmem:[%s1334_s5 + $0x28] sm:$0xff] %v642_v24  ;;  %v549_v25 = vpack.c.bf16 %v529_v23, %v528_v22 }
 0x1e8   :  { %v699_v49 = vpop.f32.mrf.mxu3 }
 0x1e9   :  { %683 = vmatmul.bf16.gmra.mxu2 %v549_v25  ;;  %v700_v51 = vadd.f32 %v1193_v56, %v699_v49 }
 0x1eb   :  { %737 = vst [vmem:[%s1334_s5 + $0xe0] sm:$0xff] %v700_v51 }
 0x1ec   :  { %v644_v26 = vpop.f32.mrf.mxu2 }
 0x1ed   :  { %v645_v27 = vadd.f32 %v1193_v56, %v644_v26 }
 0x1ef   :  { %715 = vst [vmem:[%s1334_s5 + $0x30] sm:$0xff] %v645_v27 }
 0x1f0   :  { %v701_v53 = vpop.f32.mrf.mxu3 }
 0x1f1   :  { %v702_v55 = vadd.f32 %v1193_v56, %v701_v53 }
 0x1f3   :  { %738 = vst [vmem:[%s1334_s5 + $0xe8] sm:$0xff] %v702_v55 }
 0x1f4   :  { %v646_v28 = vpop.f32.mrf.mxu2 }
 0x1f5   :  { %v647_v6 = vadd.f32 %v1193_v56, %v646_v28 }
 0x1f7   :  { %716 = vst [vmem:[%s1334_s5 + $0x38] sm:$0xff] %v647_v6 }
 0x1f8   :  { %v704_v30 = vpop.f32.mrf.mxu3 }
 0x1f9   :  { %v705_v59 = vadd.f32 %v1193_v56, %v704_v30 }
 0x1fb   :  { %739 = vst [vmem:[%s1334_s5 + $0xf0] sm:$0xff] %v705_v59 }
 0x1fc   :  { %v649_v29 = vpop.f32.mrf.mxu2 }
 0x1fd   :  { %v650_v31 = vadd.f32 %v1193_v56, %v649_v29 }
 0x1ff   :  { %717 = vst [vmem:[%s1334_s5 + $0x40] sm:$0xff] %v650_v31 }
 0x200   :  { %v706_v61 = vpop.f32.mrf.mxu3 }
 0x201   :  { %v707_v63 = vadd.f32 %v1193_v56, %v706_v61 }
 0x203   :  { %740 = vst [vmem:[%s1334_s5 + $0xf8] sm:$0xff] %v707_v63 }
 0x204   :  { %v651_v32 = vpop.f32.mrf.mxu2 }
 0x205   :  { %v652_v34 = vadd.f32 %v1193_v56, %v651_v32 }
 0x207   :  { %718 = vst [vmem:[%s1334_s5 + $0x48] sm:$0xff] %v652_v34 }
 0x20c   :  { %v654_v36 = vpop.f32.mrf.mxu2 }
 0x20d   :  { %v655_v38 = vadd.f32 %v1193_v56, %v654_v36 }
 0x20f   :  { %719 = vst [vmem:[%s1334_s5 + $0x50] sm:$0xff] %v655_v38 }
 0x214   :  { %v656_v40 = vpop.f32.mrf.mxu2 }
 0x215   :  { %v657_v42 = vadd.f32 %v1193_v56, %v656_v40 }
 0x217   :  { %720 = vst [vmem:[%s1334_s5 + $0x58] sm:$0xff] %v657_v42 }
 0x21c   :  { %v659_v44 = vpop.f32.mrf.mxu2 }
 0x21d   :  { %v660_v46 = vadd.f32 %v1193_v56, %v659_v44 }
 0x21f   :  { %721 = vst [vmem:[%s1334_s5 + $0x60] sm:$0xff] %v660_v46 }
 0x224   :  { %v661_v48 = vpop.f32.mrf.mxu2 }
 0x225   :  { %v662_v50 = vadd.f32 %v1193_v56, %v661_v48 }
 0x227   :  { %722 = vst [vmem:[%s1334_s5 + $0x68] sm:$0xff] %v662_v50 }
 0x22c   :  { %v664_v52 = vpop.f32.mrf.mxu2 }
 0x22d   :  { %v665_v54 = vadd.f32 %v1193_v56, %v664_v52 }
 0x22f   :  { %723 = vst [vmem:[%s1334_s5 + $0x70] sm:$0xff] %v665_v54 }
 0x234   :  { %v666_v57 = vpop.f32.mrf.mxu2 }
 0x235   :  { %v667_v58 = vadd.f32 %v1193_v56, %v666_v57 }
 0x237   :  { %724 = vst [vmem:[%s1334_s5 + $0x78] sm:$0xff] %v667_v58 }
 0x23c   :  { %v669_v60 = vpop.f32.mrf.mxu2 }
 0x23d   :  { %v670_v62 = vadd.f32 %v1193_v56, %v669_v60 }
 0x23f   :  { %725 = vst [vmem:[%s1334_s5 + $0x80] sm:$0xff] %v670_v62 }
 0x244   :  { %v671_v0 = vpop.f32.mrf.mxu2 }
 0x245   :  { %v672_v1 = vadd.f32 %v1193_v56, %v671_v0 }
 0x247   :  { %726 = vst [vmem:[%s1334_s5 + $0x88] sm:$0xff] %v672_v1 }
 0x24c   :  { %v674_v2 = vpop.f32.mrf.mxu2 }
 0x24d   :  { %v675_v3 = vadd.f32 %v1193_v56, %v674_v2 }
 0x24f   :  { %727 = vst [vmem:[%s1334_s5 + $0x90] sm:$0xff] %v675_v3 }
 0x254   :  { %v676_v4 = vpop.f32.mrf.mxu2 }
 0x255   :  { %v677_v5 = vadd.f32 %v1193_v56, %v676_v4 }
 0x257   :  { %728 = vst [vmem:[%s1334_s5 + $0x98] sm:$0xff] %v677_v5 }
 0x25c   :  { %v679_v7 = vpop.f32.mrf.mxu2 }
 0x25d   :  { %v680_v8 = vadd.f32 %v1193_v56, %v679_v7 }
 0x25f   :  { %729 = vst [vmem:[%s1334_s5 + $0xa0] sm:$0xff] %v680_v8 }
 0x264   :  { %v681_v9 = vpop.f32.mrf.mxu2 }
 0x265   :  { %v682_v10 = vadd.f32 %v1193_v56, %v681_v9 }
 0x267   :  { %730 = vst [vmem:[%s1334_s5 + $0xa8] sm:$0xff] %v682_v10 }
 0x26c   :  { %v684_v11 = vpop.f32.mrf.mxu2 }
 0x26d   :  { %v685_v12 = vadd.f32 %v1193_v56, %v684_v11 }
 0x26f   :  { %731 = vst [vmem:[%s1334_s5 + $0xb0] sm:$0xff] %v685_v12 }
 0x274   :  { %v686_v13 = vpop.f32.mrf.mxu2 }
 0x275   :  { %v687_v14 = vadd.f32 %v1193_v56, %v686_v13 }
 0x277   :  { %732 = vst [vmem:[%s1334_s5 + $0xb8] sm:$0xff] %v687_v14 }

</bundles_post_ra>
